<compile_context>
chip_gen: v6e
topology: v6e:2x2x1
jax: 0.10.0
libtpu: 0.0.40
codegen_flags: <defaults>
</compile_context>

<pallas_src>
import functools

import jax
import jax.numpy as jnp
import numpy as np
from jax.experimental import pallas as pl
from jax.experimental.pallas import tpu as pltpu


def _round_up(x, m):
    return (x + m - 1) // m * m


# ---------------------------------------------------------------------------
# Kernels 1 & 3: tiled matmul (optionally + bias), (rows, cols) parallel grid.
# Operands are cast to the MXU dtype in-kernel (no separate XLA cast pass).
# ---------------------------------------------------------------------------
def _matmul_kernel(x_ref, w_ref, o_ref, *, mxu_dtype):
    acc = jnp.dot(x_ref[...].astype(mxu_dtype), w_ref[...].astype(mxu_dtype),
                  preferred_element_type=jnp.float32)
    o_ref[...] = acc.astype(o_ref.dtype)


def _matmul_bias_kernel(x_ref, w_ref, b_ref, o_ref, *, mxu_dtype):
    acc = jnp.dot(x_ref[...].astype(mxu_dtype), w_ref[...].astype(mxu_dtype),
                  preferred_element_type=jnp.float32)
    acc = acc + b_ref[...]                     # (1, TN) f32, broadcast over rows
    o_ref[...] = acc.astype(o_ref.dtype)


def _tiled_matmul(x, w, *, bias=None, out_dtype=jnp.float32,
                  mxu_dtype=jnp.float32, tm_max=256, tn_max=512):
    """out[M, Nc] = x[M, K] @ w[K, Nc] (+ bias), tiled over rows and columns."""
    M, K = x.shape
    K2, Nc = w.shape
    assert K == K2

    # Row tile: multiple of 8, bounded so the double-buffered working set fits
    # even v5e's 16 MiB scoped VMEM default.  Column tile: full width if small,
    # else a 128-multiple so the weight block is (K, TN) and output lane-dense.
    TM = min(tm_max, _round_up(M, 8))
    TN = Nc if Nc <= tn_max else tn_max
    grid = (pl.cdiv(M, TM), pl.cdiv(Nc, TN))

    cost = pl.CostEstimate(
        flops=2 * M * K * Nc,
        transcendentals=0,
        bytes_accessed=(M * K * jnp.dtype(x.dtype).itemsize
                        + grid[0] * K * Nc * jnp.dtype(w.dtype).itemsize
                        + M * Nc * jnp.dtype(out_dtype).itemsize),
    )

    in_specs = [
        pl.BlockSpec((TM, K), lambda i, j: (i, 0)),
        pl.BlockSpec((K, TN), lambda i, j: (0, j)),
    ]
    args = [x, w]
    if bias is not None:
        in_specs.append(pl.BlockSpec((1, TN), lambda i, j: (0, j)))
        args.append(bias.reshape(1, Nc).astype(jnp.float32))
        kernel = functools.partial(_matmul_bias_kernel, mxu_dtype=mxu_dtype)
    else:
        kernel = functools.partial(_matmul_kernel, mxu_dtype=mxu_dtype)

    return pl.pallas_call(
        kernel,
        out_shape=jax.ShapeDtypeStruct((M, Nc), out_dtype),
        grid=grid,
        in_specs=in_specs,
        out_specs=pl.BlockSpec((TM, TN), lambda i, j: (i, j)),
        compiler_params=pltpu.CompilerParams(
            dimension_semantics=("parallel", "parallel")),
        cost_estimate=cost,
    )(*args)


# ---------------------------------------------------------------------------
# Kernel 2: fused attention core.  Grid over batch; per batch the kernel reads
# the raw (N, 3C) QKV block, loops over heads in VMEM (one (N, N) score tile
# live at a time), and writes a lane-dense (N, C) merged-heads output block.
# ---------------------------------------------------------------------------
def _attention_kernel(qkv_ref, o_ref, *, num_heads, head_dim, dim, scale,
                      approx_recip):
    C, dh = dim, head_dim
    for h in range(num_heads):                        # static unroll over heads
        q = qkv_ref[0, :, h * dh:(h + 1) * dh]        # (N, dh) compute dtype
        k = qkv_ref[0, :, C + h * dh:C + (h + 1) * dh]
        v = qkv_ref[0, :, 2 * C + h * dh:2 * C + (h + 1) * dh]
        q = q * scale                                  # fold scale into q
        s = jnp.einsum("qd,kd->qk", q, k,
                       preferred_element_type=jnp.float32)   # (N, N) f32
        m = jnp.max(s, axis=-1, keepdims=True)                # stable softmax
        p = jnp.exp(s - m)
        denom = jnp.sum(p, axis=-1, keepdims=True)
        # Deferred normalization: matmul with unnormalized p, then scale by the
        # EUP reciprocal (cheaper than N*N divides, lets p stay in bf16).
        ctx = jnp.dot(p.astype(v.dtype), v, preferred_element_type=jnp.float32)
        ctx = ctx * pl.reciprocal(denom, approx=approx_recip)
        o_ref[0, :, h * dh:(h + 1) * dh] = ctx.astype(o_ref.dtype)


def _attention_core(qkv, *, num_heads, scale, out_dtype, approx_recip):
    """qkv: [B, N, 3C] -> merged-heads context [B, N, C]."""
    B, N, C3 = qkv.shape
    C = C3 // 3
    dh = C // num_heads

    kernel = functools.partial(
        _attention_kernel, num_heads=num_heads, head_dim=dh, dim=C,
        scale=scale, approx_recip=approx_recip)

    cost = pl.CostEstimate(
        flops=4 * B * num_heads * N * N * dh,
        transcendentals=B * num_heads * N * N,
        bytes_accessed=(B * N * 3 * C * jnp.dtype(qkv.dtype).itemsize
                        + B * N * C * jnp.dtype(out_dtype).itemsize),
    )

    return pl.pallas_call(
        kernel,
        out_shape=jax.ShapeDtypeStruct((B, N, C), out_dtype),
        grid=(B,),
        in_specs=[pl.BlockSpec((1, N, 3 * C), lambda b: (b, 0, 0))],
        out_specs=pl.BlockSpec((1, N, C), lambda b: (b, 0, 0)),
        compiler_params=pltpu.CompilerParams(
            dimension_semantics=("parallel",)),
        cost_estimate=cost,
    )(qkv)


# ---------------------------------------------------------------------------
# Full Attention forward (matches the PyTorch module in eval mode).
# Weight layout: w_qkv = W_qkv_torch.T  [C, 3C], w_proj = W_proj_torch.T [C, C]
# ---------------------------------------------------------------------------
def prepare_params(w_qkv, w_proj, b_proj, compute_dtype=jnp.float32):
    """One-time weight cast so repeated forwards DMA bf16 weights directly."""
    return w_qkv.astype(compute_dtype), w_proj.astype(compute_dtype), b_proj


def attention_forward(x, w_qkv, w_proj, b_proj, *, num_heads,
                      qk_scale=None, compute_dtype=jnp.float32):
    B, N, C = x.shape
    assert C % num_heads == 0
    dh = C // num_heads
    scale = float(qk_scale) if qk_scale is not None else dh ** (-0.5)
    approx_recip = compute_dtype != jnp.float32

    x_flat = x.reshape(B * N, C)

    # --- QKV projection (no bias).  Output stored in compute_dtype so the
    #     attention core reads bf16 on the fast path. -------------------------
    qkv_flat = _tiled_matmul(x_flat, w_qkv, bias=None,
                             out_dtype=compute_dtype, mxu_dtype=compute_dtype)
    qkv = qkv_flat.reshape(B, N, 3 * C)          # free reshape, no transpose

    # --- fused scores -> softmax -> @v, heads split/merged inside the kernel --
    ctx = _attention_core(qkv, num_heads=num_heads, scale=scale,
                          out_dtype=compute_dtype, approx_recip=approx_recip)

    # --- output projection (+ bias fused in-kernel) --------------------------
    out = _tiled_matmul(ctx.reshape(B * N, C), w_proj, bias=b_proj,
                        out_dtype=jnp.float32, mxu_dtype=compute_dtype)
    return out.reshape(B, N, C)


# ---------------------------------------------------------------------------
# Deterministic parameter init (PyTorch-Linear-like uniform init)
# ---------------------------------------------------------------------------
def init_params(key, dim):
    k1, k2, k3 = jax.random.split(key, 3)
    bound = 1.0 / (dim ** 0.5)
    w_qkv = jax.random.uniform(k1, (dim, 3 * dim), jnp.float32, -bound, bound)
    w_proj = jax.random.uniform(k2, (dim, dim), jnp.float32, -bound, bound)
    b_proj = jax.random.uniform(k3, (dim,), jnp.float32, -bound, bound)
    return w_qkv, w_proj, b_proj


# ---------------------------------------------------------------------------
# Pure-JAX reference (mirrors the PyTorch forward exactly, eval mode)
# ---------------------------------------------------------------------------
def reference(x, w_qkv, w_proj, b_proj, *, num_heads, qk_scale=None):
    B, N, C = x.shape
    dh = C // num_heads
    scale = qk_scale if qk_scale is not None else dh ** (-0.5)
    qkv = jnp.einsum("bnc,cd->bnd", x, w_qkv)
    qkv = qkv.reshape(B, N, 3, num_heads, dh).transpose(2, 0, 3, 1, 4)
    q, k, v = qkv[0], qkv[1], qkv[2]
    attn = jnp.einsum("bhqd,bhkd->bhqk", q, k) * scale
    attn = jax.nn.softmax(attn, axis=-1)
    ctx = jnp.einsum("bhqk,bhkd->bhqd", attn, v)
    ctx = ctx.transpose(0, 2, 1, 3).reshape(B, N, C)
    return jnp.einsum("bnc,co->bno", ctx, w_proj) + b_proj.reshape(1, 1, C)


if __name__ == "__main__":
    key = jax.random.PRNGKey(0)
    kx, kp, kx2, kp2 = jax.random.split(key, 4)

    # Small module-consistent shapes: dim=32, num_heads=8 -> head_dim=4
    B, N, C, H = 2, 16, 32, 8
    x = jax.random.normal(kx, (B, N, C), jnp.float32)
    w_qkv, w_proj, b_proj = init_params(kp, C)

    ref = jax.block_until_ready(
        reference(x, w_qkv, w_proj, b_proj, num_heads=H))

    # f32 path: exact-precision check against the reference
    out_f32 = jax.block_until_ready(
        attention_forward(x, w_qkv, w_proj, b_proj, num_heads=H,
                          compute_dtype=jnp.float32))
    np.testing.assert_allclose(np.asarray(out_f32), np.asarray(ref),
                               rtol=2e-4, atol=2e-4)

    # bf16 MXU fast path: pre-cast weights once, qkv/attention/proj in bf16,
    # f32 accumulation everywhere.
    w_qkv_bf, w_proj_bf, b_proj_f = prepare_params(w_qkv, w_proj, b_proj,
                                                   jnp.bfloat16)
    out_bf16 = jax.block_until_ready(
        attention_forward(x, w_qkv_bf, w_proj_bf, b_proj_f, num_heads=H,
                          compute_dtype=jnp.bfloat16))
    np.testing.assert_allclose(np.asarray(out_bf16), np.asarray(ref),
                               rtol=5e-2, atol=5e-2)

    # Slightly larger shape (dh=32, lane-dense output, ragged row tiles)
    B2, N2, C2, H2 = 2, 40, 128, 4
    x2 = jax.random.normal(kx2, (B2, N2, C2), jnp.float32)
    w_qkv2, w_proj2, b_proj2 = init_params(kp2, C2)
    ref2 = jax.block_until_ready(
        reference(x2, w_qkv2, w_proj2, b_proj2, num_heads=H2))
    out2 = jax.block_until_ready(
        attention_forward(x2, w_qkv2, w_proj2, b_proj2, num_heads=H2,
                          compute_dtype=jnp.float32))
    np.testing.assert_allclose(np.asarray(out2), np.asarray(ref2),
                               rtol=2e-4, atol=2e-4)

    assert out_f32.shape == (B, N, C) and out2.shape == (B2, N2, C2)
    print("KERNEL_OK")
</pallas_src>

<mosaic_0001>
module attributes {stable_mosaic.version = 11 : i64} {
  func.func @_matmul_kernel(%arg0: i32, %arg1: i32, %arg2: memref<32x32xf32, #tpu.memory_space<vmem>>, %arg3: memref<32x96xf32, #tpu.memory_space<vmem>>, %arg4: memref<32x96xf32, #tpu.memory_space<vmem>>) attributes {dimension_semantics = [#tpu.dimension_semantics<parallel>, #tpu.dimension_semantics<parallel>], iteration_bounds = array<i64: 1, 1>, scalar_prefetch = 0 : i64, scratch_operands = 0 : i64, tpu.core_type = #tpu.core_type<tc>, window_params = [{transform_indices = @transform_0, window_bounds = array<i64: 32, 32>}, {transform_indices = @transform_1, window_bounds = array<i64: 32, 96>}, {transform_indices = @transform_2, window_bounds = array<i64: 32, 96>}]} {
    %c0 = arith.constant 0 : index
    %c0_0 = arith.constant 0 : index
    %0 = vector.load %arg2[%c0, %c0_0] : memref<32x32xf32, #tpu.memory_space<vmem>>, vector<32x32xf32>
    %c0_1 = arith.constant 0 : index
    %c0_2 = arith.constant 0 : index
    %1 = vector.load %arg3[%c0_1, %c0_2] : memref<32x96xf32, #tpu.memory_space<vmem>>, vector<32x96xf32>
    %cst = arith.constant dense<0.000000e+00> : vector<32x96xf32>
    %2 = tpu.matmul %0, %1, %cst {dimension_numbers = #tpu.dot_dimension_numbers<[1], [0], [0], [1], [0, 0, 1, 1], [], []>} : vector<32x32xf32>, vector<32x96xf32>, vector<32x96xf32> -> vector<32x96xf32>
    %c0_3 = arith.constant 0 : index
    %c0_4 = arith.constant 0 : index
    %3 = vector.load %arg4[%c0_3, %c0_4] : memref<32x96xf32, #tpu.memory_space<vmem>>, vector<32x96xf32>
    tpu.vector_store %arg4[%c0_3, %c0_4], %2 {strides = array<i32>} : memref<32x96xf32, #tpu.memory_space<vmem>>, vector<32x96xf32>,
    return
  }
  func.func @transform_0(%arg0: i32, %arg1: i32) -> (i32, i32) {
    %c0_i32 = arith.constant 0 : i32
    %c0_i32_0 = arith.constant 0 : i32
    return %arg0, %c0_i32 : i32, i32
  }
  func.func @transform_1(%arg0: i32, %arg1: i32) -> (i32, i32) {
    %c0_i32 = arith.constant 0 : i32
    %c0_i32_0 = arith.constant 0 : i32
    return %c0_i32, %arg1 : i32, i32
  }
  func.func @transform_2(%arg0: i32, %arg1: i32) -> (i32, i32) {
    %c0_i32 = arith.constant 0 : i32
    return %arg0, %arg1 : i32, i32
  }
}

</mosaic_0001>

<bundles_post_ra>
// kernel: tpu_custom_call.1
= control target key start
LH: loop header
LB: loop body
LE: loop exit
PB: predicated region body
PF: predicated region fallthrough
CT: control target
= control target key end

     0   :  { %7 = vsyncpa [#allocation3], 0  ;;  %s312_s0 = inlined_call_operand.hbm [shape: f32[32,32], index: 0, kind: input, shape index: {}]   ;;  %s313_s1 = inlined_call_operand.hbm [shape: f32[32,96], index: 1, kind: input, shape index: {}]   ;;  %s314_s2 = inlined_call_operand.hbm [shape: f32[32,96], index: 2, kind: output, shape index: {}]  }
   0x1   :  { %8 = vsyncpa [#allocation6], 0 }
   0x2   :  { %9 = vsyncpa [#allocation4], 0  ;;  %s274_s9 = smov [#allocation2]  }
   0x3   :  { %s15_s10 = sshll.u32 %s274_s9, 4  ;;  %s16_s10 = int_to_ptr.vmem [resolvable:$true] %s15_s10 }
   0x4   :  { %s216_s11 = scalar_lea.vmem %s16_s10, 512  ;;  %p221_p1 = scmp.lt.s32.totalorder %s16_s10, %s16_s10 }
   0x5   :  { %p217_p0 = scmp.ne.s32.totalorder %s16_s10, %s216_s11  ;;  %p222_p2 = scmp.lt.s32.totalorder %s216_s11, %s216_s11 }
   0x7   :  { %p223_p3 = por %p222_p2, %p221_p1 }
   0x9   :  { %p224_p4 = pnand %p223_p3, %p217_p0 }
   0xb   :  { %227 = shalt.err (!%p224_p4)
}
   0xc   :  { %s275_s12 = smov 128   ;;  %s276_s13 = smov 8  }
   0xd   :  { %21 = dma.hbm_to_vmem [thread:$0]  %s312_s0, 512, %s16_s10, [#allocation3], %s275_s12, %s275_s12, %s276_s13  }
   0xe   :  { %s277_s16 = smov [#allocation5]  }
   0xf   :  { %s27_s17 = sshll.u32 %s277_s16, 4  ;;  %s28_s17 = int_to_ptr.vmem [resolvable:$true] %s27_s17 }
  0x10   :  { %s236_s18 = scalar_lea.vmem %s28_s17, 512  ;;  %p241_p6 = scmp.lt.s32.totalorder %s28_s17, %s28_s17 }
  0x11   :  { %p237_p5 = scmp.ne.s32.totalorder %s28_s17, %s236_s18  ;;  %p242_p7 = scmp.lt.s32.totalorder %s236_s18, %s236_s18 }
  0x13   :  { %p243_p8 = por %p242_p7, %p241_p6 }
  0x15   :  { %p244_p9 = pnand %p243_p8, %p237_p5 }
  0x17   :  { %247 = shalt.err (!%p244_p9)
}
  0x18   :  { %33 = dma.hbm_to_vmem [thread:$0]  %s313_s1, 512, %s28_s17, [#allocation6], %s275_s12, %s275_s12, %s276_s13  }
  0x19   :  { %268 = dma.done.wait [#allocation3], 512  }
  0x1a   :  { %269 = vsyncadd [#allocation3], 4294966784 }
  0x1b   :  { %270 = dma.done.wait [#allocation6], 512  }
  0x1c   :  { %271 = vsyncadd [#allocation6], 4294966784  ;;  %v47_v0 = vld [vmem:[#allocation5 + $0x18] sm:$0xff]  ;;  %v46_v1 = vld [vmem:[#allocation5 + $0x10] sm:$0xff]  ;;  %vm48_vm0 = vcmask 261120   ;;  %vm146_vm1 = vcmask 785408  }
  0x1d   :  { %181 = vmatprep.subr.mxu0 %v47_v0  ;;  %195 = vmatprep.subr.mxu1 %v47_v0  ;;  %v45_v2 = vld [vmem:[#allocation5 + $0x8] sm:$0xff]  ;;  %v44_v3 = vld [vmem:[#allocation5] sm:$0xff]  ;;  %v42_v5 = vld [vmem:[#allocation2 + $0x10] sm:$0xff]  ;;  %s278_s0 = smov [#allocation7]  }
  0x1e   :  { %182 = vmatpush3.msra.mxu0 %v47_v0  ;;  %199 = vmatpush3.msra.mxu1 %v47_v0  ;;  %v40_v4 = vld [vmem:[#allocation2] sm:$0xff]  ;;  %v41_v6 = vld [vmem:[#allocation2 + $0x8] sm:$0xff]  ;;  %v43_v7 = vld [vmem:[#allocation2 + $0x18] sm:$0xff]  ;;  %s156_s1 = sshll.u32 %s278_s0, 4  ;;  %s157_s1 = int_to_ptr.vmem [resolvable:$true] %s156_s1 }
  0x1f   :  { %183 = vmatprep.subr.mxu0 %v46_v1  ;;  %196 = vmatprep.subr.mxu1 %v46_v1  ;;  %s248_s21 = scalar_lea.vmem %s157_s1, 512  ;;  %p253_p11 = scmp.lt.s32.totalorder %s157_s1, %s157_s1 }
  0x20   :  { %184 = vmatpush3.msra.mxu0 %v46_v1  ;;  %200 = vmatpush3.msra.mxu1 %v46_v1  ;;  %p249_p10 = scmp.ne.s32.totalorder %s157_s1, %s248_s21  ;;  %p254_p12 = scmp.lt.s32.totalorder %s248_s21, %s248_s21 }
  0x21   :  { %185 = vmatprep.subr.mxu0 %v45_v2  ;;  %197 = vmatprep.subr.mxu1 %v45_v2 }
  0x22   :  { %186 = vmatpush3.msra.mxu0 %v45_v2  ;;  %201 = vmatpush3.msra.mxu1 %v45_v2  ;;  %p255_p13 = por %p254_p12, %p253_p11 }
  0x23   :  { %187 = vmatprep.subr.mxu0 %v44_v3  ;;  %198 = vmatprep.subr.mxu1 %v44_v3 }
  0x24   :  { %188 = vmatpush3.msra.mxu0 %v44_v3  ;;  %202 = vmatpush3.msra.mxu1 %v44_v3  ;;  %p256_p0 = pnand %p255_p13, %p249_p10 }
  0x25   :  { %189 = vmatprep.mubr.msk.f32.mxu0 %vm48_vm0, %v40_v4  ;;  %192 = vmatprep.mubr.msk.f32.mxu1 %vm48_vm0, %v42_v5 }
  0x26   :  { %190 = vmatmul.mubr.msk.f32.vlgmr.msra.gmra.mxu0 %vm48_vm0, %v41_v6  ;;  %193 = vmatmul.mubr.msk.f32.vlgmr.msra.gmra.mxu1 %vm48_vm0, %v43_v7 }
  0xe6   :  { %v191_v8 = vpop.f32.mrf.mxu0  ;;  %v194_v9 = vpop.f32.mrf.mxu1 }
  0xe7   :  { %148 = vst.msk [vmem:[#allocation7 + $0x8] sm:$0xff] %vm146_vm1, %v191_v8  ;;  %150 = vst.msk [vmem:[#allocation7 + $0x18] sm:$0xff] %vm146_vm1, %v194_v9 }
  0xe8   :  { %v127_v10 = vpop.f32.mrf.mxu0  ;;  %v137_v11 = vpop.f32.mrf.mxu1 }
  0xe9   :  { %147 = vst.msk [vmem:[#allocation7] sm:$0xff] %vm146_vm1, %v127_v10  ;;  %149 = vst.msk [vmem:[#allocation7 + $0x10] sm:$0xff] %vm146_vm1, %v137_v11 }
  0xea   :  { %259 = shalt.err (!%p256_p0)
}
  0xeb   :  { %162 = dma.vmem_to_hbm [thread:$0]  %s157_s1, 512, %s314_s2, [#allocation4], %s275_s12, %s275_s12, %s276_s13  }
  0xec   :  { %272 = dma.done.wait [#allocation4], 512  }
  0xed   :  { %273 = vsyncadd [#allocation4], 4294966784 }
  0xee   :  { %166 = vsyncpa [#allocation3], 1 }
  0xef   :  { %167 = vsyncpa [#allocation6], 1 }
  0xf0   :  { %168 = vsyncpa [#allocation4], 1 }

</bundles_post_ra>
